<compile_context>
chip_gen: v5e
topology: v5e:2x2
jax: 0.10.0
libtpu: 0.0.40
codegen_flags: <defaults>
</compile_context>

<pallas_src>
import functools

import jax
import jax.numpy as jnp
from jax.experimental import pallas as pl
from jax.experimental.pallas import tpu as pltpu

BN_EPS = 1e-5
_LANE = 128      # TPU vreg lane width
_SUBLANE = 8     # TPU vreg sublane count


def _round_up(x, m):
    return (x + m - 1) // m * m


def _bn_relu_project(h, params_ref, w2_ref, sum_h, sum_h2, inv_batch):
    """Shared tail: training-mode BatchNorm + ReLU + h @ w2 (b2 folded into w2)."""
    mean = sum_h * inv_batch                      # [1, HP] biased batch stats
    var = sum_h2 * inv_batch - mean * mean
    gamma = params_ref[0:1, :]
    beta = params_ref[1:2, :]
    # gamma folded into the rsqrt scale: one fewer [TB, HP] multiply.
    scale = gamma * jax.lax.rsqrt(var + BN_EPS)
    h_act = jnp.maximum((h - mean) * scale + beta, 0.0)
    # b2 rides on the constant-one hidden channel H of w2 (gamma[H]=0, beta[H]=1,
    # w2[H,:C]=b2), so the MXU adds the bias for free.
    return jnp.dot(h_act.astype(w2_ref.dtype), w2_ref[...],
                   preferred_element_type=jnp.float32)


def _single_pass_kernel(x_ref, w1_ref, w2_ref, params_ref, o_ref, *, inv_batch):
    """Whole (padded) batch resident in VMEM: one grid step, one output write."""
    h = jnp.dot(x_ref[...], w1_ref[...], preferred_element_type=jnp.float32)
    sum_h = jnp.sum(h, axis=0, keepdims=True)
    sum_h2 = jnp.sum(h * h, axis=0, keepdims=True)
    o_ref[...] = _bn_relu_project(h, params_ref, w2_ref, sum_h, sum_h2, inv_batch)


def _two_pass_kernel(x_ref, w1_ref, w2_ref, params_ref, o_ref,
                     stats_ref, h_cache_ref, *, inv_batch, cache_h):
    """Streaming two-pass BatchNorm on a (pass, batch_tile) grid.

    pass 0: h = x @ w1 per tile; accumulate per-channel sum / sum-of-squares in
            VMEM scratch; optionally cache h per tile so pass 1 re-reads neither
            x nor the matmul.
    pass 1: normalize with the full-batch stats, ReLU, project.  The output
            block index collapses to 0 during pass 0 (no kernel write there),
            so each output tile is written back to HBM exactly once.
    """
    p = pl.program_id(0)   # 0 = accumulate stats, 1 = normalize + project
    t = pl.program_id(1)   # batch-tile index

    @pl.when(jnp.logical_and(p == 0, t == 0))
    def _init():
        stats_ref[...] = jnp.zeros_like(stats_ref)

    @pl.when(p == 0)
    def _accumulate():
        h = jnp.dot(x_ref[...], w1_ref[...], preferred_element_type=jnp.float32)
        stats_ref[0:1, :] = stats_ref[0:1, :] + jnp.sum(h, axis=0, keepdims=True)
        stats_ref[1:2, :] = stats_ref[1:2, :] + jnp.sum(h * h, axis=0, keepdims=True)
        if cache_h:
            h_cache_ref[t] = h

    @pl.when(p == 1)
    def _normalize_and_project():
        if cache_h:
            h = h_cache_ref[t]
        else:
            # Very-large-B fallback: re-stream x and recompute x @ w1.
            h = jnp.dot(x_ref[...], w1_ref[...], preferred_element_type=jnp.float32)
        o_ref[...] = _bn_relu_project(h, params_ref, w2_ref,
                                      stats_ref[0:1, :], stats_ref[1:2, :],
                                      inv_batch)


def min_max_classification(x, w1, b1, gamma, beta, w2, b2, *,
                           use_bf16_matmul=False,
                           max_batch_tile=1024,
                           h_cache_budget_bytes=24 * 1024 * 1024):
    """Forward pass.  Weights are pre-transposed to [in, out] (kernel does x @ W).

    b1 is accepted for API parity with the PyTorch module but not used: a Linear
    bias immediately followed by training-mode BatchNorm cancels exactly against
    the batch mean.  (Eval-mode BN with running stats would need b1 restored.)

    use_bf16_matmul casts only the MXU operands (x, w1, w2 incl. folded b2) to
    bf16; BN/ReLU element-wise math stays f32.  Safe on v5e/v6e/v7x; expect
    ~1e-2 absolute tolerance vs. the f32 reference.
    """
    del b1  # mathematically a no-op before training-mode BatchNorm

    B, F = x.shape
    H = w1.shape[1]
    C = w2.shape[1]
    HP = _LANE   # hidden padded to a full 128-lane vreg
    NP = _LANE   # class dim padded -> lane-dense (unmasked) output store
    # TODO(synk): for the very-large-B HBM-bound regime, sweep a narrow NP
    # (full-array last dim) against the masked-store penalty.
    assert H < HP and C <= NP, "hidden/class dims must fit in one padded vreg"

    # Batch tiling: minimal padding (at most 8*NB rows of zeros).
    NB = int(pl.cdiv(B, max_batch_tile))
    TB = _round_up(int(pl.cdiv(B, NB)), _SUBLANE)
    Bp = NB * TB

    mm_dtype = jnp.bfloat16 if use_bf16_matmul else jnp.float32

    # No materialized padded copy of x: cast (if needed) and pad only the
    # batch remainder.  Padded rows are zeros and (with b1 dropped) contribute
    # exactly zero to the BN statistics.
    xp = x if x.dtype == mm_dtype else x.astype(mm_dtype)
    if Bp != B:
        xp = jnp.pad(xp, ((0, Bp - B), (0, 0)))

    w1p = jnp.zeros((F, HP), jnp.float32).at[:, :H].set(w1.astype(jnp.float32))
    # b2 folded into w2 through the constant-one hidden channel (index H).
    w2p = jnp.zeros((HP, NP), jnp.float32)
    w2p = w2p.at[:H, :C].set(w2.astype(jnp.float32))
    w2p = w2p.at[H, :C].set(b2.reshape(-1).astype(jnp.float32))
    w1p = w1p.astype(mm_dtype)
    w2p = w2p.astype(mm_dtype)

    # Per-channel BN params packed into one small VMEM tile: [gamma; beta].
    # Channel H carries the constant one that routes b2 through the MXU.
    params = jnp.zeros((2, HP), jnp.float32)
    params = params.at[0, :H].set(gamma.reshape(-1).astype(jnp.float32))
    params = params.at[1, :H].set(beta.reshape(-1).astype(jnp.float32))
    params = params.at[1, H].set(1.0)

    inv_batch = 1.0 / B
    x_itm = jnp.dtype(mm_dtype).itemsize
    w_bytes = (w1p.size + w2p.size) * x_itm + params.size * 4
    out_bytes = Bp * NP * 4

    if NB == 1:
        # ---------- single-pass fast path (small / moderate B) ----------
        cost = pl.CostEstimate(
            flops=2 * Bp * F * HP + 2 * Bp * HP * NP + 8 * Bp * HP,
            transcendentals=HP,
            bytes_accessed=xp.size * x_itm + w_bytes + out_bytes,
        )
        vmem_need = (Bp * F * x_itm + Bp * HP * 4 + Bp * NP * 4
                     + (w1p.size + w2p.size) * x_itm + params.size * 4)
        out = pl.pallas_call(
            functools.partial(_single_pass_kernel, inv_batch=inv_batch),
            out_shape=jax.ShapeDtypeStruct((Bp, NP), jnp.float32),
            grid_spec=pltpu.PrefetchScalarGridSpec(
                num_scalar_prefetch=0,
                grid=(1,),
                in_specs=[
                    pl.BlockSpec((Bp, F), lambda i: (0, 0)),    # x (whole batch)
                    pl.BlockSpec((F, HP), lambda i: (0, 0)),    # w1
                    pl.BlockSpec((HP, NP), lambda i: (0, 0)),   # w2 (b2 folded)
                    pl.BlockSpec((2, HP), lambda i: (0, 0)),    # [gamma; beta]
                ],
                out_specs=pl.BlockSpec((Bp, NP), lambda i: (0, 0)),
            ),
            compiler_params=pltpu.CompilerParams(
                dimension_semantics=("arbitrary",),
                vmem_limit_bytes=int(min(48 << 20, max(16 << 20, 2 * vmem_need))),
            ),
            cost_estimate=cost,
        )(xp, w1p, w2p, params)
        return out[:B, :C]

    # ---------- two-pass streaming path (large B) ----------
    cache_h = Bp * HP * 4 <= h_cache_budget_bytes
    h_cache_shape = (NB, TB, HP) if cache_h else (1, _SUBLANE, HP)
    x_reads = 1 if cache_h else 2

    cost = pl.CostEstimate(
        flops=2 * x_reads * Bp * F * HP + 2 * Bp * HP * NP + 8 * Bp * HP,
        transcendentals=HP,
        bytes_accessed=x_reads * xp.size * x_itm + w_bytes + out_bytes,
    )

    vmem_need = (2 * TB * F * x_itm                       # double-buffered x tile
                 + 2 * TB * NP * 4                        # double-buffered out tile
                 + 2 * (w1p.size + w2p.size) * x_itm + 2 * params.size * 4
                 + 2 * HP * 4                             # stats scratch
                 + (NB * TB * HP * 4 if cache_h else _SUBLANE * HP * 4))
    vmem_limit = int(min(48 << 20, max(16 << 20, vmem_need + (8 << 20))))

    if cache_h:
        # Pass 1 never reads x: pin its block index so the pipeline issues no
        # new x DMAs after pass 0.
        x_index = lambda p, t: ((1 - p) * t, 0)
    else:
        x_index = lambda p, t: (t, 0)

    out = pl.pallas_call(
        functools.partial(_two_pass_kernel, inv_batch=inv_batch, cache_h=cache_h),
        out_shape=jax.ShapeDtypeStruct((Bp, NP), jnp.float32),
        grid_spec=pltpu.PrefetchScalarGridSpec(
            num_scalar_prefetch=0,
            grid=(2, NB),   # (pass, batch_tile); pass is the slow axis
            in_specs=[
                pl.BlockSpec((TB, F), x_index),              # x tile
                pl.BlockSpec((F, HP), lambda p, t: (0, 0)),  # w1 (fetched once)
                pl.BlockSpec((HP, NP), lambda p, t: (0, 0)), # w2 (fetched once)
                pl.BlockSpec((2, HP), lambda p, t: (0, 0)),  # [gamma; beta]
            ],
            # Collapse onto block 0 during pass 0 (no kernel write there) so
            # each output tile is written back to HBM exactly once, in pass 1,
            # and always after its pass-1 store (no stale/zero final write).
            out_specs=pl.BlockSpec((TB, NP), lambda p, t: (p * t, 0)),
            scratch_shapes=[
                pltpu.VMEM((2, HP), jnp.float32),        # [sum; sum-of-squares]
                pltpu.VMEM(h_cache_shape, jnp.float32),  # per-tile h cache
            ],
        ),
        compiler_params=pltpu.CompilerParams(
            # BN stats accumulate across batch tiles into a single VMEM scratch,
            # so both axes stay sequential.
            # TODO(synk): v7x 2-TC sharding of the tile axis (per-core partial
            # sums combined via VMEM_SHARED) only pays off for very large B.
            dimension_semantics=("arbitrary", "arbitrary"),
            vmem_limit_bytes=vmem_limit,
        ),
        cost_estimate=cost,
    )(xp, w1p, w2p, params)
    return out[:B, :C]


def reference_forward(x, w1, b1, gamma, beta, w2, b2):
    """Pure-JAX reference with full PyTorch semantics (b1 included)."""
    h = x @ w1 + b1.reshape(1, -1)
    mean = jnp.mean(h, axis=0, keepdims=True)
    var = jnp.mean((h - mean) ** 2, axis=0, keepdims=True)   # biased batch variance
    h = (h - mean) * jax.lax.rsqrt(var + BN_EPS)
    h = h * gamma.reshape(1, -1) + beta.reshape(1, -1)
    h = jnp.maximum(h, 0.0)
    return h @ w2 + b2.reshape(1, -1)


if __name__ == "__main__":
    num_feature = 32  # input features
    hidden = 16       # fixed by the module (layer_1 output / BatchNorm1d(16))
    num_class = 4

    key = jax.random.PRNGKey(0)
    kx, kw1, kb1, kw2, kb2, kg, kbt, kx2 = jax.random.split(key, 8)

    # Synthetic parameters; weights stored pre-transposed as [in, out].
    w1 = jax.random.normal(kw1, (num_feature, hidden), dtype=jnp.float32) * 0.1
    b1 = jax.random.normal(kb1, (1, hidden), dtype=jnp.float32) * 0.1
    gamma = 1.0 + 0.1 * jax.random.normal(kg, (1, hidden), dtype=jnp.float32)
    beta = 0.1 * jax.random.normal(kbt, (1, hidden), dtype=jnp.float32)
    w2 = jax.random.normal(kw2, (hidden, num_class), dtype=jnp.float32) * 0.1
    b2 = jax.random.normal(kb2, (1, num_class), dtype=jnp.float32) * 0.1

    # ---- single-pass fast path (the small-B regime the module targets) ----
    B = 8
    x = jax.random.normal(kx, (B, num_feature), dtype=jnp.float32)
    out = jax.block_until_ready(
        min_max_classification(x, w1, b1, gamma, beta, w2, b2))
    ref = reference_forward(x, w1, b1, gamma, beta, w2, b2)
    assert out.shape == (B, num_class)
    assert jnp.allclose(out, ref, atol=1e-4, rtol=1e-4)

    # ---- two-pass streaming path (h cached in VMEM), with batch padding ----
    B2 = 40
    x2 = jax.random.normal(kx2, (B2, num_feature), dtype=jnp.float32)
    ref2 = reference_forward(x2, w1, b1, gamma, beta, w2, b2)
    out2 = jax.block_until_ready(
        min_max_classification(x2, w1, b1, gamma, beta, w2, b2,
                               max_batch_tile=16))
    assert out2.shape == (B2, num_class)
    assert jnp.allclose(out2, ref2, atol=1e-4, rtol=1e-4)

    # ---- two-pass recompute fallback (h cache disabled) ----
    out3 = jax.block_until_ready(
        min_max_classification(x2, w1, b1, gamma, beta, w2, b2,
                               max_batch_tile=16, h_cache_budget_bytes=0))
    assert jnp.allclose(out3, ref2, atol=1e-4, rtol=1e-4)

    print("KERNEL_OK")
</pallas_src>

<mosaic_0001>
module attributes {stable_mosaic.version = 11 : i64} {
  func.func @_single_pass_kernel(%arg0: i32, %arg1: memref<8x32xf32, #tpu.memory_space<vmem>>, %arg2: memref<32x128xf32, #tpu.memory_space<vmem>>, %arg3: memref<128x128xf32, #tpu.memory_space<vmem>>, %arg4: memref<2x128xf32, #tpu.memory_space<vmem>>, %arg5: memref<8x128xf32, #tpu.memory_space<vmem>>) attributes {dimension_semantics = [#tpu.dimension_semantics<arbitrary>], iteration_bounds = array<i64: 1>, scalar_prefetch = 0 : i64, scratch_operands = 0 : i64, tpu.core_type = #tpu.core_type<tc>, window_params = [{pipeline_mode = #tpu.pipeline_mode<synchronous>, transform_indices = @transform_0, window_bounds = array<i64: 8, 32>}, {pipeline_mode = #tpu.pipeline_mode<synchronous>, transform_indices = @transform_1, window_bounds = array<i64: 32, 128>}, {pipeline_mode = #tpu.pipeline_mode<synchronous>, transform_indices = @transform_2, window_bounds = array<i64: 128, 128>}, {pipeline_mode = #tpu.pipeline_mode<synchronous>, transform_indices = @transform_3, window_bounds = array<i64: 2, 128>}, {pipeline_mode = #tpu.pipeline_mode<synchronous>, transform_indices = @transform_4, window_bounds = array<i64: 8, 128>}]} {
    %c0 = arith.constant 0 : index
    %c0_0 = arith.constant 0 : index
    %0 = vector.load %arg1[%c0, %c0_0] : memref<8x32xf32, #tpu.memory_space<vmem>>, vector<8x32xf32>
    %c0_1 = arith.constant 0 : index
    %c0_2 = arith.constant 0 : index
    %1 = vector.load %arg2[%c0_1, %c0_2] : memref<32x128xf32, #tpu.memory_space<vmem>>, vector<32x128xf32>
    %cst = arith.constant dense<0.000000e+00> : vector<8x128xf32>
    %2 = tpu.matmul %0, %1, %cst {dimension_numbers = #tpu.dot_dimension_numbers<[1], [0], [0], [1], [0, 0, 1, 1], [], []>} : vector<8x32xf32>, vector<32x128xf32>, vector<8x128xf32> -> vector<8x128xf32>
    %cst_3 = arith.constant dense<0.000000e+00> : vector<128xf32>
    %3 = vector.multi_reduction <add>, %2, %cst_3 [0] : vector<8x128xf32> to vector<128xf32>
    %4 = vector.shape_cast %3 : vector<128xf32> to vector<1x128xf32>
    %5 = arith.mulf %2, %2 : vector<8x128xf32>
    %cst_4 = arith.constant dense<0.000000e+00> : vector<128xf32>
    %6 = vector.multi_reduction <add>, %5, %cst_4 [0] : vector<8x128xf32> to vector<128xf32>
    %7 = vector.shape_cast %6 : vector<128xf32> to vector<1x128xf32>
    %cst_5 = arith.constant 1.250000e-01 : f32
    %8 = vector.broadcast %cst_5 : f32 to vector<1x128xf32>
    %9 = arith.mulf %4, %8 : vector<1x128xf32>
    %cst_6 = arith.constant 1.250000e-01 : f32
    %10 = vector.broadcast %cst_6 : f32 to vector<1x128xf32>
    %11 = arith.mulf %7, %10 : vector<1x128xf32>
    %12 = arith.mulf %9, %9 : vector<1x128xf32>
    %13 = arith.subf %11, %12 : vector<1x128xf32>
    %c0_7 = arith.constant 0 : index
    %c0_8 = arith.constant 0 : index
    %14 = vector.load %arg4[%c0_7, %c0_8] : memref<2x128xf32, #tpu.memory_space<vmem>>, vector<1x128xf32>
    %c1 = arith.constant 1 : index
    %c0_9 = arith.constant 0 : index
    %15 = vector.load %arg4[%c1, %c0_9] : memref<2x128xf32, #tpu.memory_space<vmem>>, vector<1x128xf32>
    %cst_10 = arith.constant 9.99999974E-6 : f32
    %16 = vector.broadcast %cst_10 : f32 to vector<1x128xf32>
    %17 = arith.addf %13, %16 : vector<1x128xf32>
    %18 = math.rsqrt %17 : vector<1x128xf32>
    %19 = arith.mulf %14, %18 : vector<1x128xf32>
    %20 = vector.broadcast %9 : vector<1x128xf32> to vector<8x128xf32>
    %21 = arith.subf %2, %20 : vector<8x128xf32>
    %22 = vector.broadcast %19 : vector<1x128xf32> to vector<8x128xf32>
    %23 = arith.mulf %21, %22 : vector<8x128xf32>
    %24 = vector.broadcast %15 : vector<1x128xf32> to vector<8x128xf32>
    %25 = arith.addf %23, %24 : vector<8x128xf32>
    %cst_11 = arith.constant 0.000000e+00 : f32
    %26 = vector.broadcast %cst_11 : f32 to vector<8x128xf32>
    %27 = arith.maximumf %25, %26 : vector<8x128xf32>
    %c0_12 = arith.constant 0 : index
    %c0_13 = arith.constant 0 : index
    %28 = vector.load %arg3[%c0_12, %c0_13] : memref<128x128xf32, #tpu.memory_space<vmem>>, vector<128x128xf32>
    %cst_14 = arith.constant dense<0.000000e+00> : vector<8x128xf32>
    %29 = tpu.matmul %27, %28, %cst_14 {dimension_numbers = #tpu.dot_dimension_numbers<[1], [0], [0], [1], [0, 0, 1, 1], [], []>} : vector<8x128xf32>, vector<128x128xf32>, vector<8x128xf32> -> vector<8x128xf32>
    %c0_15 = arith.constant 0 : index
    %c0_16 = arith.constant 0 : index
    %30 = vector.load %arg5[%c0_15, %c0_16] : memref<8x128xf32, #tpu.memory_space<vmem>>, vector<8x128xf32>
    tpu.vector_store %arg5[%c0_15, %c0_16], %29 {strides = array<i32>} : memref<8x128xf32, #tpu.memory_space<vmem>>, vector<8x128xf32>,
    return
  }
  func.func @transform_0(%arg0: i32) -> (i32, i32) {
    %c0_i32 = arith.constant 0 : i32
    %c0_i32_0 = arith.constant 0 : i32
    %c0_i32_1 = arith.constant 0 : i32
    return %c0_i32, %c0_i32_0 : i32, i32
  }
  func.func @transform_1(%arg0: i32) -> (i32, i32) {
    %c0_i32 = arith.constant 0 : i32
    %c0_i32_0 = arith.constant 0 : i32
    %c0_i32_1 = arith.constant 0 : i32
    return %c0_i32, %c0_i32_0 : i32, i32
  }
  func.func @transform_2(%arg0: i32) -> (i32, i32) {
    %c0_i32 = arith.constant 0 : i32
    %c0_i32_0 = arith.constant 0 : i32
    %c0_i32_1 = arith.constant 0 : i32
    return %c0_i32, %c0_i32_0 : i32, i32
  }
  func.func @transform_3(%arg0: i32) -> (i32, i32) {
    %c0_i32 = arith.constant 0 : i32
    %c0_i32_0 = arith.constant 0 : i32
    %c0_i32_1 = arith.constant 0 : i32
    return %c0_i32, %c0_i32_0 : i32, i32
  }
  func.func @transform_4(%arg0: i32) -> (i32, i32) {
    %c0_i32 = arith.constant 0 : i32
    %c0_i32_0 = arith.constant 0 : i32
    %c0_i32_1 = arith.constant 0 : i32
    return %c0_i32, %c0_i32_0 : i32, i32
  }
}

</mosaic_0001>

<bundles_post_ra>
// kernel: tpu_custom_call.1
= control target key start
LH: loop header
LB: loop body
LE: loop exit
PB: predicated region body
PF: predicated region fallthrough
CT: control target
= control target key end

     0   :  { %9 = vsyncpa [#allocation3], 0  ;;  %s345_s0 = inlined_call_operand.hbm [shape: f32[8,32], index: 0, kind: input, shape index: {}]   ;;  %s346_s1 = inlined_call_operand.hbm [shape: f32[32,128], index: 1, kind: input, shape index: {}]   ;;  %s347_s2 = inlined_call_operand.hbm [shape: f32[128,128], index: 2, kind: input, shape index: {}]   ;;  %s348_s3 = inlined_call_operand.vmem [shape: f32[2,128], index: 3, kind: input, shape index: {}]   ;;  %s349_s4 = inlined_call_operand.hbm [shape: f32[8,128], index: 4, kind: output, shape index: {}]  }
   0x1   :  { %10 = vsyncpa [#allocation6], 0  ;;  %s27_s17 = sshll.u32 %s346_s1, 4  ;;  %s28_s17 = int_to_ptr.hbm [resolvable:$true] %s27_s17 }
   0x2   :  { %11 = vsyncpa [#allocation4], 0  ;;  %s296_s18 = smov [#allocation5]   ;;  %s17_s22 = sshll.u32 %s345_s0, 4  ;;  %s18_s22 = int_to_ptr.hbm [resolvable:$true] %s17_s22 }
   0x3   :  { %s29_s19 = sshll.u32 %s296_s18, 4  ;;  %s297_s23 = smov 128   ;;  %s30_s19 = int_to_ptr.vmem [resolvable:$true] %s29_s19 }
   0x4   :  { %s298_s24 = smov 8   ;;  %s299_s25 = smov [#allocation2]  }
   0x5   :  { %35 = dma.hbm_to_vmem [thread:$0]  %s28_s17, 512, %s30_s19, [#allocation6], %s297_s23, %s297_s23, %s298_s24  }
   0x6   :  { %s19_s26 = sshll.u32 %s299_s25, 4  ;;  %s40_s29 = sshll.u32 %s347_s2, 4  ;;  %s20_s26 = int_to_ptr.vmem [resolvable:$true] %s19_s26  ;;  %s41_s29 = int_to_ptr.hbm [resolvable:$true] %s40_s29 }
   0x7   :  { %22 = dma.hbm_to_vmem [thread:$0]  %s18_s22, 128, %s20_s26, [#allocation3]  }
   0x8   :  { %s300_s1 = smov [#allocation7]  }
   0x9   :  { %s42_s30 = sshll.u32 %s300_s1, 4  ;;  %s43_s30 = int_to_ptr.vmem [resolvable:$true] %s42_s30 }
   0xa   :  { %48 = dma.hbm_to_vmem [thread:$0]  %s41_s29, 2048, %s43_s30, [#allocation6], %s297_s23, %s297_s23, %s298_s24  }
   0xb   :  { %290 = dma.done.wait [#allocation3], 128  }
   0xc   :  { %291 = vsyncadd [#allocation3], 4294967168 }
   0xd   :  { %292 = dma.done.wait [#allocation6], 2560  }
   0xe   :  { %293 = vsyncadd [#allocation6], 4294964736  ;;  %v67_v0 = vld [vmem:[#allocation5 + $0x18] sm:$0xff]  ;;  %v66_v1 = vld [vmem:[#allocation5 + $0x10] sm:$0xff]  ;;  %vm68_vm0 = vcmask 261120   ;;  %s301_s7 = smov [#allocation8]  }
   0xf   :  { %84 = vmatpush.msra.mxu0 %v67_v0  ;;  %v65_v2 = vld [vmem:[#allocation5 + $0x8] sm:$0xff]  ;;  %v64_v3 = vld [vmem:[#allocation5] sm:$0xff]  ;;  %v63_v4 = vld [vmem:[#allocation2] sm:$0xff]  ;;  %s171_s8 = sshll.u32 %s301_s7, 4  ;;  %s173_s11 = sshll.u32 %s349_s4, 4  ;;  %s172_s8 = int_to_ptr.vmem [resolvable:$true] %s171_s8  ;;  %s174_s11 = int_to_ptr.hbm [resolvable:$true] %s173_s11 }
  0x10   :  { %v144_v5 = vld [vmem:[#allocation7 + $0x78] sm:$0xff]  ;;  %v143_v6 = vld [vmem:[#allocation7 + $0x70] sm:$0xff]  ;;  %v142_v7 = vld [vmem:[#allocation7 + $0x68] sm:$0xff] }
  0x11   :  { %85 = vmatpush.msra.mxu0 %v66_v1  ;;  %145 = vmatpush.msra.mxu1 %v144_v5  ;;  %v141_v8 = vld [vmem:[#allocation7 + $0x60] sm:$0xff]  ;;  %v140_v9 = vld [vmem:[#allocation7 + $0x58] sm:$0xff]  ;;  %v139_v10 = vld [vmem:[#allocation7 + $0x50] sm:$0xff] }
  0x12   :  { %v138_v11 = vld [vmem:[#allocation7 + $0x48] sm:$0xff]  ;;  %v137_v12 = vld [vmem:[#allocation7 + $0x40] sm:$0xff]  ;;  %v136_v13 = vld [vmem:[#allocation7 + $0x38] sm:$0xff] }
  0x13   :  { %86 = vmatpush.msra.mxu0 %v65_v2  ;;  %146 = vmatpush.msra.mxu1 %v143_v6  ;;  %v135_v17 = vld [vmem:[#allocation7 + $0x30] sm:$0xff]  ;;  %v134_v20 = vld [vmem:[#allocation7 + $0x28] sm:$0xff]  ;;  %v133_v23 = vld [vmem:[#allocation7 + $0x20] sm:$0xff] }
  0x14   :  { %v132_v26 = vld [vmem:[#allocation7 + $0x18] sm:$0xff]  ;;  %v131_v29 = vld [vmem:[#allocation7 + $0x10] sm:$0xff]  ;;  %v130_v32 = vld [vmem:[#allocation7 + $0x8] sm:$0xff] }
  0x15   :  { %87 = vmatpush.msra.mxu0 %v64_v3  ;;  %147 = vmatpush.msra.mxu1 %v142_v7  ;;  %v129_v35 = vld [vmem:[#allocation7] sm:$0xff]  ;;  %v109_v45 = vld [vmem:[%s348_s3] sm:$0x1]  ;;  %v191_v51 = vld [vmem:[%s348_s3 + $0x1] ss:$0 sm:$0xff] }
  0x16   :  { %184 = vmatmul.msk.f32.vlgmr.msra.gmra.mxu0 %vm68_vm0, %v63_v4 }
  0x17   :  { %148 = vmatpush.msra.mxu1 %v141_v8 }
  0x19   :  { %149 = vmatpush.msra.mxu1 %v140_v9 }
  0x1b   :  { %150 = vmatpush.msra.mxu1 %v139_v10 }
  0x1d   :  { %151 = vmatpush.msra.mxu1 %v138_v11 }
  0x1f   :  { %152 = vmatpush.msra.mxu1 %v137_v12 }
  0x21   :  { %153 = vmatpush.msra.mxu1 %v136_v13 }
  0x23   :  { %154 = vmatpush.msra.mxu1 %v135_v17 }
  0x25   :  { %155 = vmatpush.msra.mxu1 %v134_v20 }
  0x27   :  { %156 = vmatpush.msra.mxu1 %v133_v23 }
  0x29   :  { %157 = vmatpush.msra.mxu1 %v132_v26 }
  0x2b   :  { %158 = vmatpush.msra.mxu1 %v131_v29 }
  0x2d   :  { %159 = vmatpush.msra.mxu1 %v130_v32 }
  0x2f   :  { %160 = vmatpush.msra.mxu1 %v129_v35 }
  0x93   :  { %v89_v14 = vpop.f32.mrf.mxu0 }
  0x94   :  { %v92_v15 = vrot.slane %v89_v14, 4  ;;  %v98_v16 = vmul.f32 %v89_v14, %v89_v14 }
  0x96   :  { %v93_v18 = vadd.f32 %v92_v15, %v89_v14  ;;  %v99_v19 = vrot.slane %v98_v16, 4 }
  0x98   :  { %v94_v21 = vrot.slane %v93_v18, 2  ;;  %v100_v22 = vadd.f32 %v99_v19, %v98_v16 }
  0x9a   :  { %v95_v24 = vadd.f32 %v94_v21, %v93_v18  ;;  %v101_v25 = vrot.slane %v100_v22, 2 }
  0x9c   :  { %v96_v27 = vrot.slane %v95_v24, 1  ;;  %v102_v28 = vadd.f32 %v101_v25, %v100_v22 }
  0x9e   :  { %v97_v30 = vadd.f32 %v96_v27, %v95_v24  ;;  %v103_v31 = vrot.slane %v102_v28, 1 }
  0xa0   :  { %v104_v33 = vadd.f32 %v103_v31, %v102_v28  ;;  %v105_v34 = vmul.f32 0.125, %v97_v30 }
  0xa2   :  { %v106_v36 = vmul.f32 0.125, %v104_v33  ;;  %v107_v37 = vmul.f32 %v105_v34, %v105_v34  ;;  %v123_v49 = vsub.f32 %v89_v14, %v105_v34 }
  0xa4   :  { %v108_v38 = vsub.f32 %v106_v36, %v107_v37 }
  0xa6   :  { %v111_v39 = vadd.f32 1e-05, %v108_v38 }
  0xa8   :  { %192 = vrsqrt.f32 %v111_v39  ;;  %vm118_vm2 = vweird.f32 %v111_v39 }
  0xae   :  { %v193_v40 = vpop.eup %192 }
  0xaf   :  { %v113_v41 = vmul.f32 %v193_v40, %v111_v39  ;;  %vm119_vm1 = vweird.f32 %v193_v40 }
  0xb0   :  { %vm120_vm3 = vmor %vm118_vm2, %vm119_vm1 }
  0xb1   :  { %v114_v42 = vmul.f32 %v193_v40, %v113_v41 }
  0xb3   :  { %v115_v43 = vmul.f32 0.5, %v114_v42 }
  0xb5   :  { %v116_v44 = vsub.f32 1.5, %v115_v43 }
  0xb7   :  { %v117_v46 = vmul.f32 %v193_v40, %v116_v44 }
  0xb9   :  { %v121_v47 = vsel %vm120_vm3, %v193_v40, %v117_v46 }
  0xba   :  { %v122_v48 = vmul.f32 %v121_v47, %v109_v45 }
  0xbc   :  { %v124_v50 = vperm.slane %v122_v48, 0 }
  0xbe   :  { %v125_v52 = vmul.f32 %v124_v50, %v123_v49 }
  0xc0   :  { %v127_v53 = vadd.f32 %v191_v51, %v125_v52 }
  0xc2   :  { %v128_v54 = vmax.f32 %v127_v53, 0.0 }
  0xc4   :  { %161 = vmatmul.f32.vlgmr.msra.gmra.mxu1 %v128_v54 }
 0x141   :  { %v162_v55 = vpop.f32.mrf.mxu1 }
 0x142   :  { %165 = vst [vmem:[#allocation8] sm:$0xff] %v162_v55 }
 0x143   :  { %176 = dma.vmem_to_hbm [thread:$0]  %s172_s8, 128, %s174_s11, [#allocation4]  }
 0x144   :  { %294 = dma.done.wait [#allocation4], 128  }
 0x145   :  { %295 = vsyncadd [#allocation4], 4294967168 }
 0x146   :  { %181 = vsyncpa [#allocation3], 1 }
 0x147   :  { %182 = vsyncpa [#allocation6], 1 }
 0x148   :  { %183 = vsyncpa [#allocation4], 1 }

</bundles_post_ra>
